<compile_context>
chip_gen: v7x
topology: tpu7x:2x2x1
jax: 0.10.0
libtpu: 0.0.40
codegen_flags: <defaults>
</compile_context>

<pallas_src>
import jax
import jax.numpy as jnp
from jax.experimental import pallas as pl
from jax.experimental.pallas import tpu as pltpu

_NEG_PAD = -1e30  # head-bias value for padded lanes -> exp underflows to 0.


def _planning_decoder_kernel(h0_ref, slab_ref, out_ref):
    """All T decode steps of the autoregressive GRU decoder in one invocation.

    h0_ref  : (1, H)        initial GRU hidden state
    slab_ref: (3H+8, 4H)    packed parameters:
                rows 0H..1H : W   (t>=1)  [w_ir+w_hr | w_iz+w_hz | w_in | w_hn]
                rows 1H..2H : W0  (t==0)  [w_hr      | w_hz      |  0   | w_hn]
                rows 2H..3H : Wh  folded linear head, zero-padded to 4H lanes
                row  3H     : Bg  packed gate biases [b_ir+b_hr | b_iz+b_hz | b_in | b_hn]
                row  3H+1   : Bh  folded head bias, pad lanes = -1e30
                rows 3H+2.. : zero padding (keeps the bias block an 8-row tile)
    out_ref : (T, 4H)       softmax probabilities per step (lanes O..4H-1 ~ 0)
    """
    H = h0_ref.shape[1]
    T = out_ref.shape[0]

    # One-time loads (hoisted out of the step loop; kept in vregs).
    W = slab_ref[0 * H:1 * H, :]            # (H, 4H)   t >= 1 gate weights
    W0 = slab_ref[1 * H:2 * H, :]           # (H, 4H)   t == 0 gate weights
    Wh = slab_ref[2 * H:3 * H, :]           # (H, 4H)   folded head weights (padded)
    Bg = slab_ref[3 * H:3 * H + 1, :]       # (1, 4H)   packed gate biases
    Bh = slab_ref[3 * H + 1:3 * H + 2, :]   # (1, 4H)   folded head bias (padded)

    def gru_step(h, Wg):
        # One MXU pass computes all four gate pre-activations.
        g = jnp.dot(h, Wg, preferred_element_type=jnp.float32) + Bg   # (1, 4H)
        sg = jax.nn.sigmoid(g)          # single full-vreg EUP issue: r | z | . | .
        r = sg[:, 0 * H:1 * H]          # lane block 0: no cross-lane move
        z = sg[:, 1 * H:2 * H]
        n = jnp.tanh(g[:, 2 * H:3 * H] + r * g[:, 3 * H:4 * H])
        return n + z * (h - n)          # == (1-z)*n + z*h

    # Step 0: GRU input is zeros -> x-side matmuls vanish (W0 packs h-only
    # weights for r/z and zeros in the n-input column block).
    h = gru_step(h0_ref[...], W0)
    hs = [h]
    # Steps 1..T-1: GRU input == previous hidden state -> folded weights W.
    for _ in range(1, T):
        h = gru_step(h, W)
        hs.append(h)

    # Batched folded 4-layer head + softmax over all T steps at once.
    hs_all = jnp.concatenate(hs, axis=0)                               # (T, H)
    logits = jnp.dot(hs_all, Wh, preferred_element_type=jnp.float32) + Bh
    m = jnp.max(logits, axis=-1, keepdims=True)
    e = jnp.exp(logits - m)            # pad lanes: exp(-1e30 - m) == 0
    s = jnp.sum(e, axis=-1, keepdims=True)
    out_ref[...] = e / s               # exact normalisation (rows sum to 1)


def _pack_slab(params, H, O):
    """Host-side (XLA) packing of all module parameters into one lane-dense slab."""
    p = {k: v.astype(jnp.float32) for k, v in params.items()}
    L = 4 * H

    w_gates = jnp.concatenate(
        [p["w_ir"] + p["w_hr"], p["w_iz"] + p["w_hz"], p["w_in"], p["w_hn"]],
        axis=1)                                                        # (H, 4H)
    w_gates0 = jnp.concatenate(
        [p["w_hr"], p["w_hz"], jnp.zeros((H, H), jnp.float32), p["w_hn"]],
        axis=1)                                                        # (H, 4H)
    b_gates = jnp.concatenate(
        [p["b_ir"] + p["b_hr"], p["b_iz"] + p["b_hz"], p["b_in"], p["b_hn"]],
        axis=1)                                                        # (1, 4H)

    w_head = p["w1"] @ p["w2"] @ p["w3"] @ p["w4"]                     # (H, O)
    b_head = (((p["b1"] @ p["w2"] + p["b2"]) @ p["w3"] + p["b3"])
              @ p["w4"] + p["b4"])                                     # (1, O)

    w_head_pad = jnp.zeros((H, L), jnp.float32).at[:, :O].set(w_head)
    b_head_pad = jnp.full((1, L), _NEG_PAD, jnp.float32).at[:, :O].set(b_head)

    bias_tile = (jnp.zeros((8, L), jnp.float32)
                 .at[0:1, :].set(b_gates)
                 .at[1:2, :].set(b_head_pad))

    # Rows: [W | W0 | Wh | bias tile]  -> (3H+8, 4H); every segment starts on
    # an 8-sublane boundary so the in-kernel static slices stay tile-aligned.
    return jnp.concatenate([w_gates, w_gates0, w_head_pad, bias_tile], axis=0)


@jax.jit
def planning_decoder_forward(hidden, target, params):
    """hidden: (1, 1, H) float32;  target: (T, 1, O) (only its shape is used).

    Returns (T, 1, O): softmax probabilities per decode step (matches PyTorch).
    """
    T, _, O = target.shape
    H = hidden.shape[2]
    assert H % 8 == 0 and (4 * H) % 128 == 0 and O <= 4 * H, \
        "lane-dense packing assumes H % 8 == 0 and 4H a multiple of 128"

    h0 = hidden.reshape(1, H).astype(jnp.float32)
    slab = _pack_slab(params, H, O)

    vmem = pl.BlockSpec(memory_space=pltpu.MemorySpace.VMEM)
    out_padded = pl.pallas_call(
        _planning_decoder_kernel,
        out_shape=jax.ShapeDtypeStruct((T, 4 * H), jnp.float32),
        in_specs=[vmem, vmem],      # exactly two input DMAs: h0 + parameter slab
        out_specs=vmem,             # lane-dense (T, 4H) output block
    )(h0, slab)

    return out_padded[:, :O].reshape(T, 1, O)


def init_params(key, hidden_dim, output_dim):
    """Deterministic synthetic parameters (shapes match the PyTorch module).

    All matrices are stored pre-transposed, i.e. shaped (in, out), so both the
    kernel and the reference compute x @ W + b (== PyTorch's x @ W.T + b).
    """
    H, O = hidden_dim, output_dim
    bound = 1.0 / jnp.sqrt(jnp.float32(H))
    names_shapes = [
        ("w_ir", (H, H)), ("w_iz", (H, H)), ("w_in", (H, H)),
        ("w_hr", (H, H)), ("w_hz", (H, H)), ("w_hn", (H, H)),
        ("b_ir", (1, H)), ("b_iz", (1, H)), ("b_in", (1, H)),
        ("b_hr", (1, H)), ("b_hz", (1, H)), ("b_hn", (1, H)),
        ("w1", (H, H)), ("b1", (1, H)),
        ("w2", (H, H)), ("b2", (1, H)),
        ("w3", (H, H)), ("b3", (1, H)),
        ("w4", (H, O)), ("b4", (1, O)),
    ]
    keys = jax.random.split(key, len(names_shapes))
    params = {}
    for k, (name, shape) in zip(keys, names_shapes):
        params[name] = jax.random.uniform(
            k, shape, jnp.float32, minval=-bound, maxval=bound
        )
    return params


def reference_forward(hidden, target, params):
    """Pure-JAX reference implementing the original (unfused) forward pass."""
    T, _, O = target.shape
    H = hidden.shape[2]
    h = hidden.reshape(1, H).astype(jnp.float32)
    x = jnp.zeros((1, H), jnp.float32)
    outs = []
    p = params
    for _ in range(T):
        r = jax.nn.sigmoid(x @ p["w_ir"] + p["b_ir"] + h @ p["w_hr"] + p["b_hr"])
        z = jax.nn.sigmoid(x @ p["w_iz"] + p["b_iz"] + h @ p["w_hz"] + p["b_hz"])
        n = jnp.tanh(x @ p["w_in"] + p["b_in"] + r * (h @ p["w_hn"] + p["b_hn"]))
        h = (1.0 - z) * n + z * h
        x = h
        zs = h @ p["w1"] + p["b1"]
        zs = zs @ p["w2"] + p["b2"]
        zs = zs @ p["w3"] + p["b3"]
        hs = zs @ p["w4"] + p["b4"]
        outs.append(jax.nn.softmax(hs, axis=-1)[None])
    return jnp.concatenate(outs, axis=0)


if __name__ == "__main__":
    # Small shapes consistent with the module: batch = 1 (the module hard-codes
    # a (1, 1, H) decoder input), hidden_dim = 32, output_dim = 16, T = 8 steps.
    input_dim, hidden_dim, output_dim = 32, 32, 16
    T = 8

    key = jax.random.PRNGKey(0)
    k_params, k_hidden, k_target = jax.random.split(key, 3)

    params = init_params(k_params, hidden_dim, output_dim)
    hidden = jax.random.normal(k_hidden, (1, 1, hidden_dim), jnp.float32)
    target = jax.random.normal(k_target, (T, 1, output_dim), jnp.float32)

    out = planning_decoder_forward(hidden, target, params)
    out = jax.block_until_ready(out)

    ref = jax.block_until_ready(reference_forward(hidden, target, params))
    assert out.shape == (T, 1, output_dim)
    # The algebraic folds (gate-weight sums, head collapse) change f32 rounding
    # order slightly; 1e-3 comfortably covers it.
    assert bool(jnp.allclose(out, ref, atol=1e-3, rtol=1e-3)), "mismatch vs reference"
    # Rows are exactly normalised (exact divide in the softmax).
    assert bool(jnp.allclose(jnp.sum(out, axis=-1), 1.0, atol=1e-5))

    print("KERNEL_OK")
</pallas_src>

<mosaic_0001>
module attributes {stable_mosaic.version = 11 : i64} {
  func.func @_planning_decoder_kernel(%arg0: memref<1x32xf32, #tpu.memory_space<vmem>>, %arg1: memref<104x128xf32, #tpu.memory_space<vmem>>, %arg2: memref<8x128xf32, #tpu.memory_space<vmem>>) attributes {dimension_semantics = [], scalar_prefetch = 0 : i64, scratch_operands = 0 : i64, tpu.core_type = #tpu.core_type<tc>} {
    %c0 = arith.constant 0 : index
    %c0_0 = arith.constant 0 : index
    %0 = vector.load %arg1[%c0, %c0_0] : memref<104x128xf32, #tpu.memory_space<vmem>>, vector<32x128xf32>
    %c32 = arith.constant 32 : index
    %c0_1 = arith.constant 0 : index
    %1 = vector.load %arg1[%c32, %c0_1] : memref<104x128xf32, #tpu.memory_space<vmem>>, vector<32x128xf32>
    %c64 = arith.constant 64 : index
    %c0_2 = arith.constant 0 : index
    %2 = vector.load %arg1[%c64, %c0_2] : memref<104x128xf32, #tpu.memory_space<vmem>>, vector<32x128xf32>
    %c96 = arith.constant 96 : index
    %c0_3 = arith.constant 0 : index
    %3 = vector.load %arg1[%c96, %c0_3] : memref<104x128xf32, #tpu.memory_space<vmem>>, vector<1x128xf32>
    %c97 = arith.constant 97 : index
    %c0_4 = arith.constant 0 : index
    %4 = vector.load %arg1[%c97, %c0_4] : memref<104x128xf32, #tpu.memory_space<vmem>>, vector<1x128xf32>
    %c0_5 = arith.constant 0 : index
    %c0_6 = arith.constant 0 : index
    %5 = vector.load %arg0[%c0_5, %c0_6] : memref<1x32xf32, #tpu.memory_space<vmem>>, vector<1x32xf32>
    %cst = arith.constant dense<0.000000e+00> : vector<1x128xf32>
    %6 = tpu.matmul %5, %1, %cst {dimension_numbers = #tpu.dot_dimension_numbers<[1], [0], [0], [1], [0, 0, 1, 1], [], []>} : vector<1x32xf32>, vector<32x128xf32>, vector<1x128xf32> -> vector<1x128xf32>
    %7 = arith.addf %6, %3 : vector<1x128xf32>
    %8 = arith.negf %7 : vector<1x128xf32>
    %9 = math.exp %8 : vector<1x128xf32>
    %cst_7 = arith.constant 1.000000e+00 : f32
    %10 = vector.broadcast %cst_7 : f32 to vector<1x128xf32>
    %11 = arith.addf %10, %9 : vector<1x128xf32>
    %12 = arith.divf %10, %11 : vector<1x128xf32>
    %13 = vector.extract_strided_slice %12 {offsets = [0, 0], sizes = [1, 32], strides = [1, 1]} : vector<1x128xf32> to vector<1x32xf32>
    %14 = vector.extract_strided_slice %12 {offsets = [0, 32], sizes = [1, 32], strides = [1, 1]} : vector<1x128xf32> to vector<1x32xf32>
    %15 = vector.extract_strided_slice %7 {offsets = [0, 64], sizes = [1, 32], strides = [1, 1]} : vector<1x128xf32> to vector<1x32xf32>
    %16 = vector.extract_strided_slice %7 {offsets = [0, 96], sizes = [1, 32], strides = [1, 1]} : vector<1x128xf32> to vector<1x32xf32>
    %17 = arith.mulf %13, %16 : vector<1x32xf32>
    %18 = arith.addf %15, %17 : vector<1x32xf32>
    %19 = math.tanh %18 : vector<1x32xf32>
    %20 = arith.subf %5, %19 : vector<1x32xf32>
    %21 = arith.mulf %14, %20 : vector<1x32xf32>
    %22 = arith.addf %19, %21 : vector<1x32xf32>
    %cst_8 = arith.constant dense<0.000000e+00> : vector<1x128xf32>
    %23 = tpu.matmul %22, %0, %cst_8 {dimension_numbers = #tpu.dot_dimension_numbers<[1], [0], [0], [1], [0, 0, 1, 1], [], []>} : vector<1x32xf32>, vector<32x128xf32>, vector<1x128xf32> -> vector<1x128xf32>
    %24 = arith.addf %23, %3 : vector<1x128xf32>
    %25 = arith.negf %24 : vector<1x128xf32>
    %26 = math.exp %25 : vector<1x128xf32>
    %cst_9 = arith.constant 1.000000e+00 : f32
    %27 = vector.broadcast %cst_9 : f32 to vector<1x128xf32>
    %28 = arith.addf %27, %26 : vector<1x128xf32>
    %29 = arith.divf %27, %28 : vector<1x128xf32>
    %30 = vector.extract_strided_slice %29 {offsets = [0, 0], sizes = [1, 32], strides = [1, 1]} : vector<1x128xf32> to vector<1x32xf32>
    %31 = vector.extract_strided_slice %29 {offsets = [0, 32], sizes = [1, 32], strides = [1, 1]} : vector<1x128xf32> to vector<1x32xf32>
    %32 = vector.extract_strided_slice %24 {offsets = [0, 64], sizes = [1, 32], strides = [1, 1]} : vector<1x128xf32> to vector<1x32xf32>
    %33 = vector.extract_strided_slice %24 {offsets = [0, 96], sizes = [1, 32], strides = [1, 1]} : vector<1x128xf32> to vector<1x32xf32>
    %34 = arith.mulf %30, %33 : vector<1x32xf32>
    %35 = arith.addf %32, %34 : vector<1x32xf32>
    %36 = math.tanh %35 : vector<1x32xf32>
    %37 = arith.subf %22, %36 : vector<1x32xf32>
    %38 = arith.mulf %31, %37 : vector<1x32xf32>
    %39 = arith.addf %36, %38 : vector<1x32xf32>
    %cst_10 = arith.constant dense<0.000000e+00> : vector<1x128xf32>
    %40 = tpu.matmul %39, %0, %cst_10 {dimension_numbers = #tpu.dot_dimension_numbers<[1], [0], [0], [1], [0, 0, 1, 1], [], []>} : vector<1x32xf32>, vector<32x128xf32>, vector<1x128xf32> -> vector<1x128xf32>
    %41 = arith.addf %40, %3 : vector<1x128xf32>
    %42 = arith.negf %41 : vector<1x128xf32>
    %43 = math.exp %42 : vector<1x128xf32>
    %cst_11 = arith.constant 1.000000e+00 : f32
    %44 = vector.broadcast %cst_11 : f32 to vector<1x128xf32>
    %45 = arith.addf %44, %43 : vector<1x128xf32>
    %46 = arith.divf %44, %45 : vector<1x128xf32>
    %47 = vector.extract_strided_slice %46 {offsets = [0, 0], sizes = [1, 32], strides = [1, 1]} : vector<1x128xf32> to vector<1x32xf32>
    %48 = vector.extract_strided_slice %46 {offsets = [0, 32], sizes = [1, 32], strides = [1, 1]} : vector<1x128xf32> to vector<1x32xf32>
    %49 = vector.extract_strided_slice %41 {offsets = [0, 64], sizes = [1, 32], strides = [1, 1]} : vector<1x128xf32> to vector<1x32xf32>
    %50 = vector.extract_strided_slice %41 {offsets = [0, 96], sizes = [1, 32], strides = [1, 1]} : vector<1x128xf32> to vector<1x32xf32>
    %51 = arith.mulf %47, %50 : vector<1x32xf32>
    %52 = arith.addf %49, %51 : vector<1x32xf32>
    %53 = math.tanh %52 : vector<1x32xf32>
    %54 = arith.subf %39, %53 : vector<1x32xf32>
    %55 = arith.mulf %48, %54 : vector<1x32xf32>
    %56 = arith.addf %53, %55 : vector<1x32xf32>
    %cst_12 = arith.constant dense<0.000000e+00> : vector<1x128xf32>
    %57 = tpu.matmul %56, %0, %cst_12 {dimension_numbers = #tpu.dot_dimension_numbers<[1], [0], [0], [1], [0, 0, 1, 1], [], []>} : vector<1x32xf32>, vector<32x128xf32>, vector<1x128xf32> -> vector<1x128xf32>
    %58 = arith.addf %57, %3 : vector<1x128xf32>
    %59 = arith.negf %58 : vector<1x128xf32>
    %60 = math.exp %59 : vector<1x128xf32>
    %cst_13 = arith.constant 1.000000e+00 : f32
    %61 = vector.broadcast %cst_13 : f32 to vector<1x128xf32>
    %62 = arith.addf %61, %60 : vector<1x128xf32>
    %63 = arith.divf %61, %62 : vector<1x128xf32>
    %64 = vector.extract_strided_slice %63 {offsets = [0, 0], sizes = [1, 32], strides = [1, 1]} : vector<1x128xf32> to vector<1x32xf32>
    %65 = vector.extract_strided_slice %63 {offsets = [0, 32], sizes = [1, 32], strides = [1, 1]} : vector<1x128xf32> to vector<1x32xf32>
    %66 = vector.extract_strided_slice %58 {offsets = [0, 64], sizes = [1, 32], strides = [1, 1]} : vector<1x128xf32> to vector<1x32xf32>
    %67 = vector.extract_strided_slice %58 {offsets = [0, 96], sizes = [1, 32], strides = [1, 1]} : vector<1x128xf32> to vector<1x32xf32>
    %68 = arith.mulf %64, %67 : vector<1x32xf32>
    %69 = arith.addf %66, %68 : vector<1x32xf32>
    %70 = math.tanh %69 : vector<1x32xf32>
    %71 = arith.subf %56, %70 : vector<1x32xf32>
    %72 = arith.mulf %65, %71 : vector<1x32xf32>
    %73 = arith.addf %70, %72 : vector<1x32xf32>
    %cst_14 = arith.constant dense<0.000000e+00> : vector<1x128xf32>
    %74 = tpu.matmul %73, %0, %cst_14 {dimension_numbers = #tpu.dot_dimension_numbers<[1], [0], [0], [1], [0, 0, 1, 1], [], []>} : vector<1x32xf32>, vector<32x128xf32>, vector<1x128xf32> -> vector<1x128xf32>
    %75 = arith.addf %74, %3 : vector<1x128xf32>
    %76 = arith.negf %75 : vector<1x128xf32>
    %77 = math.exp %76 : vector<1x128xf32>
    %cst_15 = arith.constant 1.000000e+00 : f32
    %78 = vector.broadcast %cst_15 : f32 to vector<1x128xf32>
    %79 = arith.addf %78, %77 : vector<1x128xf32>
    %80 = arith.divf %78, %79 : vector<1x128xf32>
    %81 = vector.extract_strided_slice %80 {offsets = [0, 0], sizes = [1, 32], strides = [1, 1]} : vector<1x128xf32> to vector<1x32xf32>
    %82 = vector.extract_strided_slice %80 {offsets = [0, 32], sizes = [1, 32], strides = [1, 1]} : vector<1x128xf32> to vector<1x32xf32>
    %83 = vector.extract_strided_slice %75 {offsets = [0, 64], sizes = [1, 32], strides = [1, 1]} : vector<1x128xf32> to vector<1x32xf32>
    %84 = vector.extract_strided_slice %75 {offsets = [0, 96], sizes = [1, 32], strides = [1, 1]} : vector<1x128xf32> to vector<1x32xf32>
    %85 = arith.mulf %81, %84 : vector<1x32xf32>
    %86 = arith.addf %83, %85 : vector<1x32xf32>
    %87 = math.tanh %86 : vector<1x32xf32>
    %88 = arith.subf %73, %87 : vector<1x32xf32>
    %89 = arith.mulf %82, %88 : vector<1x32xf32>
    %90 = arith.addf %87, %89 : vector<1x32xf32>
    %cst_16 = arith.constant dense<0.000000e+00> : vector<1x128xf32>
    %91 = tpu.matmul %90, %0, %cst_16 {dimension_numbers = #tpu.dot_dimension_numbers<[1], [0], [0], [1], [0, 0, 1, 1], [], []>} : vector<1x32xf32>, vector<32x128xf32>, vector<1x128xf32> -> vector<1x128xf32>
    %92 = arith.addf %91, %3 : vector<1x128xf32>
    %93 = arith.negf %92 : vector<1x128xf32>
    %94 = math.exp %93 : vector<1x128xf32>
    %cst_17 = arith.constant 1.000000e+00 : f32
    %95 = vector.broadcast %cst_17 : f32 to vector<1x128xf32>
    %96 = arith.addf %95, %94 : vector<1x128xf32>
    %97 = arith.divf %95, %96 : vector<1x128xf32>
    %98 = vector.extract_strided_slice %97 {offsets = [0, 0], sizes = [1, 32], strides = [1, 1]} : vector<1x128xf32> to vector<1x32xf32>
    %99 = vector.extract_strided_slice %97 {offsets = [0, 32], sizes = [1, 32], strides = [1, 1]} : vector<1x128xf32> to vector<1x32xf32>
    %100 = vector.extract_strided_slice %92 {offsets = [0, 64], sizes = [1, 32], strides = [1, 1]} : vector<1x128xf32> to vector<1x32xf32>
    %101 = vector.extract_strided_slice %92 {offsets = [0, 96], sizes = [1, 32], strides = [1, 1]} : vector<1x128xf32> to vector<1x32xf32>
    %102 = arith.mulf %98, %101 : vector<1x32xf32>
    %103 = arith.addf %100, %102 : vector<1x32xf32>
    %104 = math.tanh %103 : vector<1x32xf32>
    %105 = arith.subf %90, %104 : vector<1x32xf32>
    %106 = arith.mulf %99, %105 : vector<1x32xf32>
    %107 = arith.addf %104, %106 : vector<1x32xf32>
    %cst_18 = arith.constant dense<0.000000e+00> : vector<1x128xf32>
    %108 = tpu.matmul %107, %0, %cst_18 {dimension_numbers = #tpu.dot_dimension_numbers<[1], [0], [0], [1], [0, 0, 1, 1], [], []>} : vector<1x32xf32>, vector<32x128xf32>, vector<1x128xf32> -> vector<1x128xf32>
    %109 = arith.addf %108, %3 : vector<1x128xf32>
    %110 = arith.negf %109 : vector<1x128xf32>
    %111 = math.exp %110 : vector<1x128xf32>
    %cst_19 = arith.constant 1.000000e+00 : f32
    %112 = vector.broadcast %cst_19 : f32 to vector<1x128xf32>
    %113 = arith.addf %112, %111 : vector<1x128xf32>
    %114 = arith.divf %112, %113 : vector<1x128xf32>
    %115 = vector.extract_strided_slice %114 {offsets = [0, 0], sizes = [1, 32], strides = [1, 1]} : vector<1x128xf32> to vector<1x32xf32>
    %116 = vector.extract_strided_slice %114 {offsets = [0, 32], sizes = [1, 32], strides = [1, 1]} : vector<1x128xf32> to vector<1x32xf32>
    %117 = vector.extract_strided_slice %109 {offsets = [0, 64], sizes = [1, 32], strides = [1, 1]} : vector<1x128xf32> to vector<1x32xf32>
    %118 = vector.extract_strided_slice %109 {offsets = [0, 96], sizes = [1, 32], strides = [1, 1]} : vector<1x128xf32> to vector<1x32xf32>
    %119 = arith.mulf %115, %118 : vector<1x32xf32>
    %120 = arith.addf %117, %119 : vector<1x32xf32>
    %121 = math.tanh %120 : vector<1x32xf32>
    %122 = arith.subf %107, %121 : vector<1x32xf32>
    %123 = arith.mulf %116, %122 : vector<1x32xf32>
    %124 = arith.addf %121, %123 : vector<1x32xf32>
    %cst_20 = arith.constant dense<0.000000e+00> : vector<1x128xf32>
    %125 = tpu.matmul %124, %0, %cst_20 {dimension_numbers = #tpu.dot_dimension_numbers<[1], [0], [0], [1], [0, 0, 1, 1], [], []>} : vector<1x32xf32>, vector<32x128xf32>, vector<1x128xf32> -> vector<1x128xf32>
    %126 = arith.addf %125, %3 : vector<1x128xf32>
    %127 = arith.negf %126 : vector<1x128xf32>
    %128 = math.exp %127 : vector<1x128xf32>
    %cst_21 = arith.constant 1.000000e+00 : f32
    %129 = vector.broadcast %cst_21 : f32 to vector<1x128xf32>
    %130 = arith.addf %129, %128 : vector<1x128xf32>
    %131 = arith.divf %129, %130 : vector<1x128xf32>
    %132 = vector.extract_strided_slice %131 {offsets = [0, 0], sizes = [1, 32], strides = [1, 1]} : vector<1x128xf32> to vector<1x32xf32>
    %133 = vector.extract_strided_slice %131 {offsets = [0, 32], sizes = [1, 32], strides = [1, 1]} : vector<1x128xf32> to vector<1x32xf32>
    %134 = vector.extract_strided_slice %126 {offsets = [0, 64], sizes = [1, 32], strides = [1, 1]} : vector<1x128xf32> to vector<1x32xf32>
    %135 = vector.extract_strided_slice %126 {offsets = [0, 96], sizes = [1, 32], strides = [1, 1]} : vector<1x128xf32> to vector<1x32xf32>
    %136 = arith.mulf %132, %135 : vector<1x32xf32>
    %137 = arith.addf %134, %136 : vector<1x32xf32>
    %138 = math.tanh %137 : vector<1x32xf32>
    %139 = arith.subf %124, %138 : vector<1x32xf32>
    %140 = arith.mulf %133, %139 : vector<1x32xf32>
    %141 = arith.addf %138, %140 : vector<1x32xf32>
    %142 = tpu.concatenate %22, %39, %56, %73, %90, %107, %124, %141 in 0 : vector<1x32xf32>, vector<1x32xf32>, vector<1x32xf32>, vector<1x32xf32>, vector<1x32xf32>, vector<1x32xf32>, vector<1x32xf32>, vector<1x32xf32> -> vector<8x32xf32>
    %cst_22 = arith.constant dense<0.000000e+00> : vector<8x128xf32>
    %143 = tpu.matmul %142, %2, %cst_22 {dimension_numbers = #tpu.dot_dimension_numbers<[1], [0], [0], [1], [0, 0, 1, 1], [], []>} : vector<8x32xf32>, vector<32x128xf32>, vector<8x128xf32> -> vector<8x128xf32>
    %144 = vector.broadcast %4 : vector<1x128xf32> to vector<8x128xf32>
    %145 = arith.addf %143, %144 : vector<8x128xf32>
    %cst_23 = arith.constant dense<0xFF800000> : vector<8xf32>
    %146 = vector.multi_reduction <maximumf>, %145, %cst_23 [1] : vector<8x128xf32> to vector<8xf32>
    %147 = vector.shape_cast %146 : vector<8xf32> to vector<8x1xf32>
    %148 = vector.broadcast %147 : vector<8x1xf32> to vector<8x128xf32>
    %149 = arith.subf %145, %148 : vector<8x128xf32>
    %150 = math.exp %149 : vector<8x128xf32>
    %cst_24 = arith.constant dense<0.000000e+00> : vector<8xf32>
    %151 = vector.multi_reduction <add>, %150, %cst_24 [1] : vector<8x128xf32> to vector<8xf32>
    %152 = vector.shape_cast %151 : vector<8xf32> to vector<8x1xf32>
    %153 = vector.broadcast %152 : vector<8x1xf32> to vector<8x128xf32>
    %154 = arith.divf %150, %153 : vector<8x128xf32>
    %c0_25 = arith.constant 0 : index
    %c0_26 = arith.constant 0 : index
    %155 = vector.load %arg2[%c0_25, %c0_26] : memref<8x128xf32, #tpu.memory_space<vmem>>, vector<8x128xf32>
    tpu.vector_store %arg2[%c0_25, %c0_26], %154 {strides = array<i32>} : memref<8x128xf32, #tpu.memory_space<vmem>>, vector<8x128xf32>,
    return
  }
}

</mosaic_0001>

<bundles_post_ra>
// kernel: planning_decoder_forward.1
= control target key start
LH: loop header
LB: loop body
LE: loop exit
PB: predicated region body
PF: predicated region fallthrough
CT: control target
= control target key end

     0   :  { %v1304_v3 = vmov 0.0|0.0   ;;  %vm1305_vm0 = vmmov 0   ;;  %v1306_v6 = vmov 0.0   ;;  %s1528_s0 = inlined_call_operand.vmem [shape: f32[1,32], index: 0, kind: input, shape index: {}]   ;;  %s1529_s1 = inlined_call_operand.vmem [shape: f32[104,128], index: 1, kind: input, shape index: {}]   ;;  %s1530_s2 = inlined_call_operand.hbm [shape: f32[8,128], index: 2, kind: output, shape index: {}]  }
   0x1   :  { %v16_v0 = vld [vmem:[%s1529_s1 + $0x20] sm:$0xff]  ;;  %v17_v1 = vld [vmem:[%s1529_s1 + $0x28] sm:$0xff]  ;;  %v18_v2 = vld [vmem:[%s1529_s1 + $0x30] sm:$0xff]  ;;  %1166 = vmatprep.subr.bf16.mxu0 %v1304_v3  ;;  %1075 = vmatprep.mubr.msk.f32.mxu0 %vm1305_vm0, %v1306_v6 }
   0x2   :  { %v1167_v4 = vpack.c.bf16 %v17_v1, %v16_v0  ;;  %v19_v5 = vld [vmem:[%s1529_s1 + $0x38] sm:$0xff]  ;;  %1172 = vmatprep.subr.bf16.mxu1 %v1304_v3  ;;  %1086 = vmatprep.mubr.msk.f32.mxu1 %vm1305_vm0, %v1306_v6 }
   0x3   :  { %7 = vsyncpa [#allocation3], 0  ;;  %v1170_v7 = vpack.c.bf16 %v19_v5, %v18_v2  ;;  %v26_v8 = vld [vmem:[%s1528_s0] sm:$0x1]  ;;  %vm27_vm1 = vcmask 261120   ;;  %s1307_s21 = smov 32   ;;  %v122_v23 = vlaneseq }
   0x4   :  { %1168 = vmatpush3.bf16.msra.mxu0 %v1167_v4  ;;  %v1356_v9 = vld [vmem:[%s1529_s1 + $0x60] sm:$0x1]  ;;  %s1308_s0 = smov 64   ;;  %v1309_v21 = vmov 1966171168   ;;  %v13_v35 = vld [vmem:[%s1529_s1 + $0x8] sm:$0xff] }
   0x5   :  { %1169 = vmatprep.subr.bf16.mxu0 %v1304_v3  ;;  %v120_v22 = vunpack.c.l.s4 %v1309_v21  ;;  %v123_v25 = vshrl.u32 %v122_v23, 7  ;;  %v12_v34 = vld [vmem:[%s1529_s1] sm:$0xff]  ;;  %v14_v36 = vld [vmem:[%s1529_s1 + $0x10] sm:$0xff]  ;;  %v15_v38 = vld [vmem:[%s1529_s1 + $0x18] sm:$0xff]  ;;  %s1310_s30 = smov 96   ;;  %vm887_vm2 = vcmask 1040384  }
   0x6   :  { %v1372_v37 = vpack.c.bf16 %v13_v35, %v12_v34  ;;  %v1378_v39 = vpack.c.bf16 %v15_v38, %v14_v36  ;;  %vm889_vm3 = vcmask 1041408   ;;  %vm891_vm4 = vcmask 1042432   ;;  %s1311_s13 = smov [#allocation2]  }
   0x7   :  { %v121_v24 = vunpack.c.0.s8 %v120_v22  ;;  %v140_v30 = vsub.s32 0, %v123_v25  ;;  %vm893_vm5 = vcmask 1043456   ;;  %vm895_vm6 = vcmask 1044480   ;;  %s996_s14 = sshll.u32 %s1311_s13, 4  ;;  %s997_s14 = int_to_ptr.vmem [resolvable:$true] %s996_s14 }
   0x8   :  { %1171 = vmatpush3.bf16.msra.mxu0 %v1170_v7  ;;  %1174 = vmatpush3.bf16.msra.mxu1 %v1372_v37  ;;  %vm897_vm7 = vcmask 1045504   ;;  %vm899_vm8 = vcmask 1046528   ;;  %s1280_s15 = scalar_lea.vmem %s997_s14, 128  ;;  %p1285_p1 = scmp.lt.s32.totalorder %s997_s14, %s997_s14 }
   0x9   :  { %1178 = vmatprep.subr.bf16.mxu0 %v1304_v3  ;;  %v124_v26 = vsub.s32 %v121_v24, %v123_v25  ;;  %1175 = vmatprep.subr.bf16.mxu1 %v1304_v3  ;;  %p1281_p0 = scmp.ne.s32.totalorder %s997_s14, %s1280_s15  ;;  %p1286_p2 = scmp.lt.s32.totalorder %s1280_s15, %s1280_s15 }
   0xb   :  { %1076 = vmatmul.mubr.msk.f32.vlgmr.msra.gmra.mrb[0].mxu0 %vm27_vm1, %v26_v8  ;;  %p1287_p3 = por %p1286_p2, %p1285_p1 }
   0xc   :  { %1097 = vmatprep.mubr.msk.f32.mxu0 %vm1305_vm0, %v1306_v6  ;;  %1180 = vmatpush3.bf16.msra.mxu0 %v1372_v37 }
   0xd   :  { %1181 = vmatprep.subr.bf16.mxu0 %v1304_v3  ;;  %1177 = vmatpush3.bf16.msra.mxu1 %v1378_v39  ;;  %p1288_p4 = pnand %p1287_p3, %p1281_p0 }
   0xe   :  { %1184 = vmatprep.subr.bf16.mxu1 %v1304_v3 }
  0x10   :  { %1183 = vmatpush3.bf16.msra.mxu0 %v1378_v39 }
  0x11   :  { %1190 = vmatprep.subr.bf16.mxu0 %v1304_v3 }
  0xde   :  { %v97_v10 = vpop.f32.mrb[0].mxu0 }
  0xdf   :  { %v98_v11 = vadd.f32 %v97_v10, %v1356_v9  ;;  %v1077_v12 = vpop.f32.mrb[1].mxu0 }
  0xe1   :  { %108 = vrot.lane.b32.xlu0 %v98_v11, %s1307_s21  ;;  %v1005_v13 = vmul.f32 -1.442695, %v98_v11 }
  0xe3   :  { %1228 = vpow2.f32 %v1005_v13 }
  0xed   :  { %v1229_v14 = vpop.eup %1228 }
  0xee   :  { %v104_v15 = vadd.f32 1.0, %v1229_v14 }
  0xf0   :  { %1230 = vrcp.f32 %v104_v15 }
  0xfa   :  { %v1231_v16 = vpop.eup %1230 }
 0x153   :  { %v109_v17 = vpop.permute.xlu0 %108 }
 0x154   :  { %v111_v18 = vmul.f32 %v1231_v16, %v109_v17 }
 0x156   :  { %113 = vrot.lane.b32.xlu0 %v111_v18, %s1308_s0 }
 0x1c8   :  { %v114_v19 = vpop.permute.xlu0 %113 }
 0x1c9   :  { %v116_v20 = vadd.f32 %v114_v19, %v98_v11 }
 0x1cb   :  { %1232 = vtanh.f32 %v116_v20 }
 0x1d5   :  { %v1233_v27 = vpop.eup %1232 }
 0x1d6   :  { %v125_v28 = vrot.slane %v1233_v27, %v124_v26 }
 0x1d8   :  { %v132_v29 = vrot.slane %v125_v28, %v124_v26 }
 0x1da   :  { %133 = vrot.lane.b32.xlu1 %v132_v29, %s1308_s0 }
 0x24c   :  { %v134_v31 = vpop.permute.xlu1 %133 }
 0x24d   :  { %v136_v32 = vsub.f32 %v26_v8, %v134_v31 }
 0x24f   :  { %v141_v33 = vrot.slane %v136_v32, %v140_v30 }
 0x251   :  { %142 = vrot.lane.b32.xlu1 %v141_v33, %s1307_s21 }
 0x2c3   :  { %v143_v40 = vpop.permute.xlu1 %142 }
 0x2c4   :  { %v145_v41 = vmul.f32 %v1231_v16, %v143_v40 }
 0x2c6   :  { %147 = vrot.lane.b32.xlu0 %v145_v41, %s1307_s21 }
 0x338   :  { %v148_v42 = vpop.permute.xlu0 %147 }
 0x339   :  { %v1388_v43 = vadd.f32 %v1233_v27, %v148_v42 }
 0x33b   :  { %152 = vrot.lane.b32.xlu1 %v1388_v43, %s1308_s0 }
 0x3ad   :  { %v153_v44 = vpop.permute.xlu1 %152 }
 0x3ae   :  { %1087 = vmatmul.mubr.msk.f32.vlgmr.msra.gmra.mrb[0].mxu1 %vm27_vm1, %v153_v44 }
 0x3af   :  { %1186 = vmatpush3.bf16.msra.mxu1 %v1372_v37  ;;  %1108 = vmatprep.mubr.msk.f32.mxu1 %vm1305_vm0, %v1306_v6 }
 0x3b0   :  { %1187 = vmatprep.subr.bf16.mxu1 %v1304_v3 }
 0x3b3   :  { %1189 = vmatpush3.bf16.msra.mxu1 %v1378_v39 }
 0x3b4   :  { %1196 = vmatprep.subr.bf16.mxu1 %v1304_v3 }
 0x481   :  { %v222_v45 = vpop.f32.mrb[0].mxu1 }
 0x482   :  { %v223_v46 = vadd.f32 %v222_v45, %v1356_v9  ;;  %v1088_v47 = vpop.f32.mrb[1].mxu1 }
 0x484   :  { %233 = vrot.lane.b32.xlu0 %v223_v46, %s1307_s21  ;;  %v1007_v48 = vmul.f32 -1.442695, %v223_v46 }
 0x486   :  { %1234 = vpow2.f32 %v1007_v48 }
 0x490   :  { %v1235_v49 = vpop.eup %1234 }
 0x491   :  { %v229_v50 = vadd.f32 1.0, %v1235_v49 }
 0x493   :  { %1236 = vrcp.f32 %v229_v50 }
 0x49d   :  { %v1237_v51 = vpop.eup %1236 }
 0x4f6   :  { %v234_v52 = vpop.permute.xlu0 %233 }
 0x4f7   :  { %v236_v53 = vmul.f32 %v1237_v51, %v234_v52 }
 0x4f9   :  { %238 = vrot.lane.b32.xlu1 %v236_v53, %s1308_s0 }
 0x56b   :  { %v239_v54 = vpop.permute.xlu1 %238 }
 0x56c   :  { %v241_v55 = vadd.f32 %v239_v54, %v223_v46 }
 0x56e   :  { %1238 = vtanh.f32 %v241_v55 }
 0x578   :  { %v1239_v56 = vpop.eup %1238 }
 0x579   :  { %v243_v57 = vsub.f32 %v1388_v43, %v1239_v56 }
 0x57b   :  { %245 = vrot.lane.b32.xlu0 %v243_v57, %s1310_s30 }
 0x5ed   :  { %v246_v58 = vpop.permute.xlu0 %245 }
 0x5ee   :  { %v248_v59 = vmul.f32 %v1237_v51, %v246_v58 }
 0x5f0   :  { %250 = vrot.lane.b32.xlu1 %v248_v59, %s1307_s21 }
 0x662   :  { %v251_v60 = vpop.permute.xlu1 %250 }
 0x663   :  { %v1405_v61 = vadd.f32 %v1239_v56, %v251_v60 }
 0x665   :  { %255 = vrot.lane.b32.xlu0 %v1405_v61, %s1308_s0 }
 0x6d7   :  { %v256_v62 = vpop.permute.xlu0 %255 }
 0x6d8   :  { %1098 = vmatmul.mubr.msk.f32.vlgmr.msra.gmra.mrb[2].mxu0 %vm27_vm1, %v256_v62 }
 0x6d9   :  { %1192 = vmatpush3.bf16.msra.mxu0 %v1372_v37  ;;  %1119 = vmatprep.mubr.msk.f32.mxu0 %vm1305_vm0, %v1306_v6 }
 0x6da   :  { %1193 = vmatprep.subr.bf16.mxu0 %v1304_v3 }
 0x6dd   :  { %1195 = vmatpush3.bf16.msra.mxu0 %v1378_v39 }
 0x6de   :  { %1202 = vmatprep.subr.bf16.mxu0 %v1304_v3 }
 0x7ab   :  { %v325_v63 = vpop.f32.mrb[2].mxu0 }
 0x7ac   :  { %v326_v0 = vadd.f32 %v325_v63, %v1356_v9  ;;  %v1099_v1 = vpop.f32.mrb[3].mxu0 }
 0x7ae   :  { %336 = vrot.lane.b32.xlu1 %v326_v0, %s1307_s21  ;;  %v1009_v2 = vmul.f32 -1.442695, %v326_v0 }
 0x7b0   :  { %1240 = vpow2.f32 %v1009_v2 }
 0x7ba   :  { %v1241_v4 = vpop.eup %1240 }
 0x7bb   :  { %v332_v5 = vadd.f32 1.0, %v1241_v4 }
 0x7bd   :  { %1242 = vrcp.f32 %v332_v5 }
 0x7c7   :  { %v1243_v7 = vpop.eup %1242 }
 0x820   :  { %v337_v8 = vpop.permute.xlu1 %336 }
 0x821   :  { %v339_v10 = vmul.f32 %v1243_v7, %v337_v8 }
 0x823   :  { %341 = vrot.lane.b32.xlu0 %v339_v10, %s1308_s0 }
 0x895   :  { %v342_v11 = vpop.permute.xlu0 %341 }
 0x896   :  { %v344_v12 = vadd.f32 %v342_v11, %v326_v0 }
 0x898   :  { %1244 = vtanh.f32 %v344_v12 }
 0x8a2   :  { %v1245_v13 = vpop.eup %1244 }
 0x8a3   :  { %v346_v14 = vsub.f32 %v1405_v61, %v1245_v13 }
 0x8a5   :  { %348 = vrot.lane.b32.xlu1 %v346_v14, %s1310_s30 }
 0x917   :  { %v349_v15 = vpop.permute.xlu1 %348 }
 0x918   :  { %v351_v16 = vmul.f32 %v1243_v7, %v349_v15 }
 0x91a   :  { %353 = vrot.lane.b32.xlu0 %v351_v16, %s1307_s21 }
 0x98c   :  { %v354_v17 = vpop.permute.xlu0 %353 }
 0x98d   :  { %v1422_v18 = vadd.f32 %v1245_v13, %v354_v17 }
 0x98f   :  { %358 = vrot.lane.b32.xlu1 %v1422_v18, %s1308_s0 }
 0xa01   :  { %v359_v19 = vpop.permute.xlu1 %358 }
 0xa02   :  { %1109 = vmatmul.mubr.msk.f32.vlgmr.msra.gmra.mrb[2].mxu1 %vm27_vm1, %v359_v19 }
 0xa03   :  { %1198 = vmatpush3.bf16.msra.mxu1 %v1372_v37  ;;  %1130 = vmatprep.mubr.msk.f32.mxu1 %vm1305_vm0, %v1306_v6 }
 0xa04   :  { %1199 = vmatprep.subr.bf16.mxu1 %v1304_v3 }
 0xa07   :  { %1201 = vmatpush3.bf16.msra.mxu1 %v1378_v39 }
 0xa08   :  { %1208 = vmatprep.subr.bf16.mxu1 %v1304_v3 }
 0xad5   :  { %v428_v20 = vpop.f32.mrb[2].mxu1 }
 0xad6   :  { %v429_v21 = vadd.f32 %v428_v20, %v1356_v9  ;;  %v1110_v22 = vpop.f32.mrb[3].mxu1 }
 0xad8   :  { %439 = vrot.lane.b32.xlu0 %v429_v21, %s1307_s21  ;;  %v1011_v23 = vmul.f32 -1.442695, %v429_v21 }
 0xada   :  { %1246 = vpow2.f32 %v1011_v23 }
 0xae4   :  { %v1247_v24 = vpop.eup %1246 }
 0xae5   :  { %v435_v25 = vadd.f32 1.0, %v1247_v24 }
 0xae7   :  { %1248 = vrcp.f32 %v435_v25 }
 0xaf1   :  { %v1249_v26 = vpop.eup %1248 }
 0xb4a   :  { %v440_v27 = vpop.permute.xlu0 %439 }
 0xb4b   :  { %v442_v28 = vmul.f32 %v1249_v26, %v440_v27 }
 0xb4d   :  { %444 = vrot.lane.b32.xlu1 %v442_v28, %s1308_s0 }
 0xbbf   :  { %v445_v29 = vpop.permute.xlu1 %444 }
 0xbc0   :  { %v447_v30 = vadd.f32 %v445_v29, %v429_v21 }
 0xbc2   :  { %1250 = vtanh.f32 %v447_v30 }
 0xbcc   :  { %v1251_v31 = vpop.eup %1250 }
 0xbcd   :  { %v449_v32 = vsub.f32 %v1422_v18, %v1251_v31 }
 0xbcf   :  { %451 = vrot.lane.b32.xlu0 %v449_v32, %s1310_s30 }
 0xc41   :  { %v452_v33 = vpop.permute.xlu0 %451 }
 0xc42   :  { %v454_v34 = vmul.f32 %v1249_v26, %v452_v33 }
 0xc44   :  { %456 = vrot.lane.b32.xlu1 %v454_v34, %s1307_s21 }
 0xcb6   :  { %v457_v35 = vpop.permute.xlu1 %456 }
 0xcb7   :  { %v1439_v36 = vadd.f32 %v1251_v31, %v457_v35 }
 0xcb9   :  { %461 = vrot.lane.b32.xlu0 %v1439_v36, %s1308_s0 }
 0xd2b   :  { %v462_v38 = vpop.permute.xlu0 %461 }
 0xd2c   :  { %1120 = vmatmul.mubr.msk.f32.vlgmr.msra.gmra.mrb[4].mxu0 %vm27_vm1, %v462_v38 }
 0xd2d   :  { %1204 = vmatpush3.bf16.msra.mxu0 %v1372_v37  ;;  %1141 = vmatprep.mubr.msk.f32.mxu0 %vm1305_vm0, %v1306_v6 }
 0xd2e   :  { %1205 = vmatprep.subr.bf16.mxu0 %v1304_v3 }
 0xd31   :  { %1207 = vmatpush3.bf16.msra.mxu0 %v1378_v39 }
 0xd32   :  { %1214 = vmatprep.subr.bf16.mxu0 %v1304_v3 }
 0xdff   :  { %v531_v40 = vpop.f32.mrb[4].mxu0 }
 0xe00   :  { %v532_v41 = vadd.f32 %v531_v40, %v1356_v9  ;;  %v1121_v42 = vpop.f32.mrb[5].mxu0 }
 0xe02   :  { %542 = vrot.lane.b32.xlu1 %v532_v41, %s1307_s21  ;;  %v1013_v44 = vmul.f32 -1.442695, %v532_v41 }
 0xe04   :  { %1252 = vpow2.f32 %v1013_v44 }
 0xe0e   :  { %v1253_v45 = vpop.eup %1252 }
 0xe0f   :  { %v538_v46 = vadd.f32 1.0, %v1253_v45 }
 0xe11   :  { %1254 = vrcp.f32 %v538_v46 }
 0xe1b   :  { %v1255_v47 = vpop.eup %1254 }
 0xe74   :  { %v543_v48 = vpop.permute.xlu1 %542 }
 0xe75   :  { %v545_v49 = vmul.f32 %v1255_v47, %v543_v48 }
 0xe77   :  { %547 = vrot.lane.b32.xlu0 %v545_v49, %s1308_s0 }
 0xee9   :  { %v548_v50 = vpop.permute.xlu0 %547 }
 0xeea   :  { %v550_v51 = vadd.f32 %v548_v50, %v532_v41  ;;  %v21_v50 = vld [vmem:[%s1529_s1 + $0x48] sm:$0xff] }
 0xeec   :  { %1256 = vtanh.f32 %v550_v51  ;;  %v22_v51 = vld [vmem:[%s1529_s1 + $0x50] sm:$0xff] }
 0xef6   :  { %v1257_v52 = vpop.eup %1256 }
 0xef7   :  { %v552_v53 = vsub.f32 %v1439_v36, %v1257_v52 }
 0xef9   :  { %554 = vrot.lane.b32.xlu1 %v552_v53, %s1310_s30  ;;  %v23_v53 = vld [vmem:[%s1529_s1 + $0x58] sm:$0xff] }
 0xf6b   :  { %v555_v54 = vpop.permute.xlu1 %554 }
 0xf6c   :  { %v557_v55 = vmul.f32 %v1255_v47, %v555_v54  ;;  %v1218_v54 = vpack.c.bf16 %v23_v53, %v22_v51 }
 0xf6e   :  { %559 = vrot.lane.b32.xlu0 %v557_v55, %s1307_s21 }
 0xfe0   :  { %v560_v56 = vpop.permute.xlu0 %559 }
 0xfe1   :  { %v1456_v57 = vadd.f32 %v1257_v52, %v560_v56 }
 0xfe3   :  { %564 = vrot.lane.b32.xlu1 %v1456_v57, %s1308_s0 }
0x1055   :  { %v565_v58 = vpop.permute.xlu1 %564 }
0x1056   :  { %1131 = vmatmul.mubr.msk.f32.vlgmr.msra.gmra.mrb[4].mxu1 %vm27_vm1, %v565_v58  ;;  %v872_v58 = vrot.slane %v1405_v61, 7 }
0x1057   :  { %1210 = vmatpush3.bf16.msra.mxu1 %v1372_v37  ;;  %1152 = vmatprep.mubr.msk.f32.mxu1 %vm1305_vm0, %v1306_v6 }
0x1058   :  { %1211 = vmatprep.subr.bf16.mxu1 %v1304_v3 }
0x105b   :  { %1213 = vmatpush3.bf16.msra.mxu1 %v1378_v39 }
0x1129   :  { %v634_v59 = vpop.f32.mrb[4].mxu1 }
0x112a   :  { %v635_v60 = vadd.f32 %v634_v59, %v1356_v9  ;;  %v1132_v62 = vpop.f32.mrb[5].mxu1  ;;  %v874_v59 = vrot.slane %v1422_v18, 6 }
0x112b   :  { %v878_v62 = vrot.slane %v1456_v57, 4 }
0x112c   :  { %645 = vrot.lane.b32.xlu0 %v635_v60, %s1307_s21  ;;  %v1015_v63 = vmul.f32 -1.442695, %v635_v60 }
0x112e   :  { %1258 = vpow2.f32 %v1015_v63  ;;  %v888_v63 = vsel %vm887_vm2, %v1388_v43, %v872_v58  ;;  %v1020_v43 = vld [vmem:[%s1529_s1 + $0x61] ss:$0 sm:$0xff] }
0x1138   :  { %v1259_v0 = vpop.eup %1258 }
0x1139   :  { %v641_v1 = vadd.f32 1.0, %v1259_v0  ;;  %v890_v0 = vsel %vm889_vm3, %v888_v63, %v874_v59 }
0x113b   :  { %1260 = vrcp.f32 %v641_v1 }
0x1145   :  { %v1261_v2 = vpop.eup %1260 }
0x119e   :  { %v646_v37 = vpop.permute.xlu0 %645 }
0x119f   :  { %v648_v4 = vmul.f32 %v1261_v2, %v646_v37 }
0x11a1   :  { %650 = vrot.lane.b32.xlu1 %v648_v4, %s1308_s0 }
0x1213   :  { %v651_v5 = vpop.permute.xlu1 %650 }
0x1214   :  { %v653_v7 = vadd.f32 %v651_v5, %v635_v60  ;;  %v876_v60 = vrot.slane %v1439_v36, 5 }
0x1216   :  { %1262 = vtanh.f32 %v653_v7  ;;  %v892_v37 = vsel %vm891_vm4, %v890_v0, %v876_v60 }
0x1217   :  { %v894_v4 = vsel %vm893_vm5, %v892_v37, %v878_v62 }
0x1220   :  { %v1263_v39 = vpop.eup %1262 }
0x1221   :  { %v655_v8 = vsub.f32 %v1456_v57, %v1263_v39 }
0x1223   :  { %657 = vrot.lane.b32.xlu0 %v655_v8, %s1310_s30 }
0x1295   :  { %v658_v10 = vpop.permute.xlu0 %657 }
0x1296   :  { %v660_v11 = vmul.f32 %v1261_v2, %v658_v10 }
0x1298   :  { %662 = vrot.lane.b32.xlu1 %v660_v11, %s1307_s21 }
0x130a   :  { %v663_v12 = vpop.permute.xlu1 %662 }
0x130b   :  { %v1472_v13 = vadd.f32 %v1263_v39, %v663_v12 }
0x130d   :  { %667 = vrot.lane.b32.xlu0 %v1472_v13, %s1308_s0 }
0x137f   :  { %v668_v14 = vpop.permute.xlu0 %667 }
0x1380   :  { %1142 = vmatmul.mubr.msk.f32.vlgmr.msra.gmra.mrb[6].mxu0 %vm27_vm1, %v668_v14 }
0x1381   :  { %1163 = vmatprep.mubr.msk.f32.mxu0 %vm1305_vm0, %v1306_v6 }
0x1453   :  { %v737_v15 = vpop.f32.mrb[6].mxu0 }
0x1454   :  { %v738_v16 = vadd.f32 %v737_v15, %v1356_v9  ;;  %v1143_v17 = vpop.f32.mrb[7].mxu0 }
0x1456   :  { %748 = vrot.lane.b32.xlu1 %v738_v16, %s1307_s21  ;;  %v1017_v19 = vmul.f32 -1.442695, %v738_v16 }
0x1458   :  { %1264 = vpow2.f32 %v1017_v19 }
0x1462   :  { %v1265_v20 = vpop.eup %1264 }
0x1463   :  { %v744_v21 = vadd.f32 1.0, %v1265_v20 }
0x1465   :  { %1266 = vrcp.f32 %v744_v21 }
0x146f   :  { %v1267_v22 = vpop.eup %1266 }
0x14c8   :  { %v749_v23 = vpop.permute.xlu1 %748 }
0x14c9   :  { %v751_v24 = vmul.f32 %v1267_v22, %v749_v23 }
0x14cb   :  { %753 = vrot.lane.b32.xlu0 %v751_v24, %s1308_s0 }
0x153d   :  { %v754_v25 = vpop.permute.xlu0 %753 }
0x153e   :  { %v756_v26 = vadd.f32 %v754_v25, %v738_v16 }
0x1540   :  { %1268 = vtanh.f32 %v756_v26 }
0x154a   :  { %v1269_v6 = vpop.eup %1268 }
0x154b   :  { %v758_v27 = vsub.f32 %v1472_v13, %v1269_v6 }
0x154d   :  { %760 = vrot.lane.b32.xlu1 %v758_v27, %s1310_s30 }
0x15bf   :  { %v761_v28 = vpop.permute.xlu1 %760 }
0x15c0   :  { %v763_v29 = vmul.f32 %v1267_v22, %v761_v28 }
0x15c2   :  { %765 = vrot.lane.b32.xlu0 %v763_v29, %s1307_s21 }
0x1634   :  { %v766_v30 = vpop.permute.xlu0 %765 }
0x1635   :  { %v768_v31 = vadd.f32 %v1269_v6, %v766_v30 }
0x1637   :  { %770 = vrot.lane.b32.xlu1 %v768_v31, %s1308_s0  ;;  %v882_v1 = vrot.slane %v768_v31, 2 }
0x16a9   :  { %v771_v32 = vpop.permute.xlu1 %770 }
0x16aa   :  { %1153 = vmatmul.mubr.msk.f32.vlgmr.msra.gmra.mrb[6].mxu1 %vm27_vm1, %v771_v32 }
0x177d   :  { %v840_v33 = vpop.f32.mrb[6].mxu1 }
0x177e   :  { %v841_v34 = vadd.f32 %v840_v33, %v1356_v9  ;;  %v1154_v35 = vpop.f32.mrb[7].mxu1  ;;  %v20_v9 = vld [vmem:[%s1529_s1 + $0x40] sm:$0xff] }
0x177f   :  { %v1215_v52 = vpack.c.bf16 %v21_v50, %v20_v9 }
0x1780   :  { %851 = vrot.lane.b32.xlu0 %v841_v34, %s1307_s21  ;;  %v1019_v38 = vmul.f32 -1.442695, %v841_v34 }
0x1781   :  { %1216 = vmatpush3.bf16.msra.mxu0 %v1215_v52 }
0x1782   :  { %1270 = vpow2.f32 %v1019_v38  ;;  %1217 = vmatprep.subr.bf16.mxu0 %v1304_v3  ;;  %v880_v3 = vrot.slane %v1472_v13, 3 }
0x1784   :  { %v896_v5 = vsel %vm895_vm6, %v894_v4, %v880_v3 }
0x1785   :  { %1219 = vmatpush3.bf16.msra.mxu0 %v1218_v54  ;;  %v898_v36 = vsel %vm897_vm7, %v896_v5, %v882_v1 }
0x178c   :  { %v1271_v40 = vpop.eup %1270 }
0x178d   :  { %v847_v41 = vadd.f32 1.0, %v1271_v40 }
0x178f   :  { %1272 = vrcp.f32 %v847_v41 }
0x1799   :  { %v1273_v42 = vpop.eup %1272 }
0x17f2   :  { %v852_v44 = vpop.permute.xlu0 %851 }
0x17f3   :  { %v854_v45 = vmul.f32 %v1273_v42, %v852_v44 }
0x17f5   :  { %856 = vrot.lane.b32.xlu1 %v854_v45, %s1308_s0 }
0x1867   :  { %v857_v46 = vpop.permute.xlu1 %856 }
0x1868   :  { %v859_v47 = vadd.f32 %v857_v46, %v841_v34 }
0x186a   :  { %1274 = vtanh.f32 %v859_v47 }
0x1874   :  { %v1275_v48 = vpop.eup %1274 }
0x1875   :  { %v861_v49 = vsub.f32 %v768_v31, %v1275_v48 }
0x1877   :  { %863 = vrot.lane.b32.xlu0 %v861_v49, %s1310_s30 }
0x18e9   :  { %v864_v55 = vpop.permute.xlu0 %863 }
0x18ea   :  { %v866_v56 = vmul.f32 %v1273_v42, %v864_v55 }
0x18ec   :  { %868 = vrot.lane.b32.xlu1 %v866_v56, %s1307_s21 }
0x195e   :  { %v869_v2 = vpop.permute.xlu1 %868 }
0x195f   :  { %v871_v61 = vadd.f32 %v1275_v48, %v869_v2 }
0x1961   :  { %v885_v18 = vrot.slane %v871_v61, 1 }
0x1963   :  { %v900_v7 = vsel %vm899_vm8, %v898_v36, %v885_v18 }
0x1964   :  { %906 = vrot.lane.b32.xlu0 %v900_v7, %s1308_s0 }
0x19d6   :  { %v907_v57 = vpop.permute.xlu0 %906 }
0x19d7   :  { %1164 = vmatmul.mubr.msk.f32.vlgmr.msra.gmra.mrb[8].mxu0 %vm27_vm1, %v907_v57 }
0x1aaa   :  { %v976_v39 = vpop.f32.mrb[8].mxu0 }
0x1aab   :  { %v977_v8 = vadd.f32 %v1020_v43, %v976_v39  ;;  %v1165_v10 = vpop.f32.mrb[9].mxu0 }
0x1aad   :  { %980 = vmax.xlane.f32.xlu1 %v977_v8 }
0x1b3a   :  { %v981_v11 = vpop.xlane.xlu1 %980 }
0x1b3b   :  { %v982_v12 = vsub.f32 %v977_v8, %v981_v11 }
0x1b3d   :  { %v983_v13 = vmul.f32 1.442695, %v982_v12 }
0x1b3f   :  { %1276 = vpow2.f32 %v983_v13 }
0x1b49   :  { %v1277_v14 = vpop.eup %1276 }
0x1b4a   :  { %985 = vadd.xlane.f32.xlu0 %v1277_v14 }
0x1bd7   :  { %v986_v15 = vpop.xlane.xlu0 %985 }
0x1bd8   :  { %1278 = vrcp.f32 %v986_v15 }
0x1be2   :  { %v1279_v16 = vpop.eup %1278 }
0x1be3   :  { %v988_v17 = vmul.f32 %v1279_v16, %v1277_v14 }
0x1be5   :  { %989 = vst [vmem:[#allocation2] sm:$0xff] %v988_v17 }
0x1be6   :  { %1291 = shalt.err (!%p1288_p4)
}
0x1be7   :  { %s1292_s17 = scalar_lea.hbm %s1530_s2, 128 }
0x1be8   :  { %p1293_p5 = scmp.ne.s32.totalorder %s1530_s2, %s1292_s17  ;;  %p1296_p6 = scmp.lt.u32.totalorder %s1292_s17, %s1530_s2 }
0x1bea   :  { %p1298_p7 = pnand %p1296_p6, %p1293_p5 }
0x1bec   :  { %1301 = shalt.err (!%p1298_p7)
}
0x1bed   :  { %999 = dma.vmem_to_hbm [thread:$0]  %s997_s14, 128, %s1530_s2, [#allocation3]  }
0x1bee   :  { %1302 = dma.done.wait [#allocation3], 128  }
0x1bef   :  { %1303 = vsyncadd [#allocation3], 4294967168 }
0x1bf0   :  { %1003 = vsyncpa [#allocation3], 1 }

</bundles_post_ra>
